<compile_context>
chip_gen: v7x
topology: tpu7x:2x2x1
jax: 0.10.0
libtpu: 0.0.40
codegen_flags: <defaults>
</compile_context>

<pallas_src>
import jax
import jax.numpy as jnp
import numpy as np
from jax import lax
from jax.experimental import pallas as pl
from jax.experimental.pallas import tpu as pltpu


def _round_up(x, m):
    return (x + m - 1) // m * m


def _cdiv(a, b):
    return (a + b - 1) // b


def _pick_tile(dim, cap, align):
    """Largest balanced tile <= cap; minimizes zero-padding for awkward dims."""
    dim_a = _round_up(dim, align)
    if dim_a <= cap:
        return dim_a
    n = _cdiv(dim_a, cap)
    tile = _round_up(_cdiv(dim, n), align)
    while tile > cap:
        n += 1
        tile = _round_up(_cdiv(dim, n), align)
    return tile


def _force_split(dim, align):
    """Tile yielding >= 2 blocks along `dim`, or None if the dim is too small."""
    if dim <= align:
        return None
    t = _round_up(_cdiv(dim, 2), align)
    if _round_up(dim, t) // t >= 2:
        return t
    return None


def _vmem_limit_bytes(requested):
    """Generation-aware scoped-VMEM limit: 75% of physical capacity."""
    try:
        cap = int(pltpu.get_tpu_info().vmem_capacity_bytes)
    except Exception:
        cap = 64 << 20  # conservative (v7x-sized) fallback
    hard = (cap * 3) // 4
    return min(max(requested, 16 << 20), hard)


def _make_kernel(has_bias, square_in_kernel, use_scratch, precision):
    def kernel(*refs):
        x_ref, w_ref = refs[0], refs[1]
        idx = 2
        b_ref = None
        if has_bias:
            b_ref = refs[idx]
            idx += 1
        o_ref = refs[idx]
        idx += 1
        acc_ref = refs[idx] if use_scratch else o_ref  # f32 out: accumulate in place

        k = pl.program_id(2)

        @pl.when(k == 0)
        def _():
            acc_ref[...] = jnp.zeros_like(acc_ref)

        w = w_ref[...]
        if square_in_kernel:
            w = w * w  # weight = log_weight ** 2 (one VPU op, hidden under MXU)

        # (tm, tk) . (tn, tk) contracted on the shared K axis -> (tm, tn);
        # MXU consumes the (out, in) weight tile directly, no transpose.
        acc_ref[...] += lax.dot_general(
            x_ref[...], w,
            dimension_numbers=(((1,), (1,)), ((), ())),
            preferred_element_type=jnp.float32,
            precision=precision)

        if use_scratch or has_bias:
            @pl.when(k == pl.num_programs(2) - 1)
            def _():
                acc = acc_ref[...]
                if has_bias:
                    acc = acc + b_ref[...]  # bias added exactly once
                o_ref[...] = acc.astype(o_ref.dtype)

    return kernel


def positive_linear(x, log_weight, bias=None, *, use_bf16=True):
    """out = x @ (log_weight ** 2).T (+ bias).  x: (..., in); log_weight: (out, in)."""
    orig_shape = x.shape
    in_f = orig_shape[-1]
    out_f, in_f2 = log_weight.shape
    assert in_f == in_f2, (in_f, in_f2)
    out_dtype = x.dtype

    x2d = x.reshape(-1, in_f)
    B = x2d.shape[0]

    # ---- operand preparation ------------------------------------------------
    if use_bf16:
        # Pre-square once in f32, store bf16: halves every weight re-stream and
        # feeds the MXU its native dtype. f32 accumulation stays in-kernel.
        w_in = (log_weight * log_weight).astype(jnp.bfloat16)
        x_in = x2d.astype(jnp.bfloat16)
        square_in_kernel = False
        precision = None
        sub_align = 16  # bf16 sublane packing
    else:
        w_in = log_weight
        x_in = x2d
        square_in_kernel = True
        precision = lax.Precision.HIGHEST  # exact-f32 parity path
        sub_align = 8

    # ---- balanced tile selection --------------------------------------------
    tm = _pick_tile(B, 512, sub_align)
    tn = _pick_tile(out_f, 1024, 128)
    tk = _pick_tile(in_f, 512, 128)

    # v7x: 2 TensorCores are sharded over the parallel grid axes; keep >= 2
    # parallel (M, N) blocks whenever the problem allows it.
    if (_round_up(B, tm) // tm) * (_round_up(out_f, tn) // tn) < 2:
        tm2 = _force_split(B, sub_align)
        if tm2 is not None:
            tm = tm2
        else:
            tn2 = _force_split(out_f, 128)
            if tn2 is not None:
                tn = tn2

    Bp, Np, Kp = _round_up(B, tm), _round_up(out_f, tn), _round_up(in_f, tk)

    # Zero-padding is semantically free (zero rows/cols contribute nothing).
    if (Bp, Kp) != (B, in_f):
        x_in = jnp.pad(x_in, ((0, Bp - B), (0, Kp - in_f)))
    if (Np, Kp) != (out_f, in_f):
        w_in = jnp.pad(w_in, ((0, Np - out_f), (0, Kp - in_f)))

    grid = (Bp // tm, Np // tn, Kp // tk)

    in_specs = [
        pl.BlockSpec((tm, tk), lambda i, j, k: (i, k)),   # x tile
        pl.BlockSpec((tn, tk), lambda i, j, k: (j, k)),   # (out, in) weight tile
    ]
    inputs = [x_in, w_in]

    has_bias = bias is not None
    if has_bias:
        b2d = jnp.pad(bias.astype(jnp.float32), (0, Np - out_f)).reshape(1, Np)
        in_specs.append(pl.BlockSpec((1, tn), lambda i, j, k: (0, j)))
        inputs.append(b2d)

    # f32 outputs accumulate directly into the resident output block.
    use_scratch = jnp.dtype(out_dtype) != jnp.dtype(jnp.float32)
    scratch_shapes = [pltpu.VMEM((tm, tn), jnp.float32)] if use_scratch else []

    in_item = 2 if use_bf16 else 4
    out_item = jnp.dtype(out_dtype).itemsize
    est = (2 * tm * tk * in_item + 2 * tn * tk * in_item
           + 2 * tm * tn * out_item
           + (tm * tn * 4 if use_scratch else 0)
           + (2 * tn * 4 if has_bias else 0))
    vmem_bytes = _vmem_limit_bytes(est + (4 << 20))

    out = pl.pallas_call(
        _make_kernel(has_bias, square_in_kernel, use_scratch, precision),
        out_shape=jax.ShapeDtypeStruct((Bp, Np), out_dtype),
        grid_spec=pltpu.PrefetchScalarGridSpec(
            num_scalar_prefetch=0,
            grid=grid,
            in_specs=in_specs,
            out_specs=pl.BlockSpec((tm, tn), lambda i, j, k: (i, j)),
            scratch_shapes=scratch_shapes,
        ),
        compiler_params=pltpu.CompilerParams(
            dimension_semantics=("parallel", "parallel", "arbitrary"),
            vmem_limit_bytes=vmem_bytes,
        ),
    )(*inputs)

    out = out[:B, :out_f]
    if len(orig_shape) != 2:
        out = out.reshape(*orig_shape[:-1], out_f)
    return out


def init_positive_linear_params(key, in_features, out_features, bias=False):
    """Deterministic init mirroring PositiveLinear.reset_parameters()."""
    kw, kb = jax.random.split(key)
    # xavier_uniform_: U(-a, a), a = sqrt(6 / (fan_in + fan_out))
    a = np.sqrt(6.0 / (in_features + out_features))
    w = jax.random.uniform(kw, (out_features, in_features),
                           minval=-a, maxval=a, dtype=jnp.float32)
    # .abs_().sqrt_()
    log_weight = jnp.sqrt(jnp.abs(w))
    b = None
    if bias:
        fan_in = in_features
        bound = np.sqrt(1.0 / np.sqrt(fan_in))
        b = jax.random.uniform(kb, (out_features,),
                               minval=-bound, maxval=bound, dtype=jnp.float32)
    return log_weight, b


def _reference(x, log_weight, bias=None, cast_bf16=False):
    xr = np.asarray(x, np.float32)
    w2 = np.asarray(log_weight, np.float32) ** 2
    if cast_bf16:  # match the kernel's bf16 input rounding (accumulation is f32)
        xr = np.asarray(jnp.asarray(xr).astype(jnp.bfloat16).astype(jnp.float32))
        w2 = np.asarray(jnp.asarray(w2).astype(jnp.bfloat16).astype(jnp.float32))
    out = xr @ w2.T
    if bias is not None:
        out = out + np.asarray(bias, np.float32)
    return out


if __name__ == "__main__":
    key = jax.random.PRNGKey(0)

    # --- Small case (module's demo scale), with bias -------------------------
    k_x, k_p, key = jax.random.split(key, 3)
    batch, in_features, out_features = 8, 32, 16
    x = jax.random.normal(k_x, (batch, in_features), dtype=jnp.float32)
    log_weight, bias = init_positive_linear_params(
        k_p, in_features, out_features, bias=True)

    # Default fast path: bf16 MXU inputs, f32 accumulation.
    out_bf16 = jax.block_until_ready(positive_linear(x, log_weight, bias))
    np.testing.assert_allclose(
        np.asarray(out_bf16), _reference(x, log_weight, bias, cast_bf16=True),
        rtol=2e-3, atol=2e-3)

    # Exact-f32 path (precision=HIGHEST).
    out_f32 = jax.block_until_ready(
        positive_linear(x, log_weight, bias, use_bf16=False))
    np.testing.assert_allclose(
        np.asarray(out_f32), _reference(x, log_weight, bias),
        rtol=1e-5, atol=1e-5)

    # --- Non-multiple dims exercising balanced tiles + multi-step K ----------
    k_x2, k_p2 = jax.random.split(key)
    B2, in2, out2 = 300, 600, 384
    x2 = jax.random.normal(k_x2, (B2, in2), dtype=jnp.float32)
    log_weight2, _ = init_positive_linear_params(k_p2, in2, out2, bias=False)

    out_big = jax.block_until_ready(positive_linear(x2, log_weight2))
    np.testing.assert_allclose(
        np.asarray(out_big), _reference(x2, log_weight2, cast_bf16=True),
        rtol=2e-3, atol=2e-3)

    print("KERNEL_OK")
</pallas_src>

<mosaic_0001>
module attributes {stable_mosaic.version = 11 : i64} {
  func.func @kernel(%arg0: i32, %arg1: i32, %arg2: i32, %arg3: memref<16x128xbf16, #tpu.memory_space<vmem>>, %arg4: memref<128x128xbf16, #tpu.memory_space<vmem>>, %arg5: memref<1x128xf32, #tpu.memory_space<vmem>>, %arg6: memref<16x128xf32, #tpu.memory_space<vmem>>) attributes {dimension_semantics = [#tpu.dimension_semantics<parallel>, #tpu.dimension_semantics<parallel>, #tpu.dimension_semantics<arbitrary>], iteration_bounds = array<i64: 1, 1, 1>, scalar_prefetch = 0 : i64, scratch_operands = 0 : i64, tpu.core_type = #tpu.core_type<tc>, window_params = [{transform_indices = @transform_0, window_bounds = array<i64: 16, 128>}, {transform_indices = @transform_1, window_bounds = array<i64: 128, 128>}, {transform_indices = @transform_2, window_bounds = array<i64: 1, 128>}, {transform_indices = @transform_3, window_bounds = array<i64: 16, 128>}]} {
    %c0_i32 = arith.constant 0 : i32
    %0 = arith.cmpi eq, %arg2, %c0_i32 : i32
    %1 = arith.extui %0 : i1 to i32
    %c0_i32_0 = arith.constant 0 : i32
    %2 = arith.cmpi ne, %1, %c0_i32_0 : i32
    scf.if %2 {
      %cst_10 = arith.constant 0.000000e+00 : f32
      %12 = vector.broadcast %cst_10 : f32 to vector<16x128xf32>
      %c0_11 = arith.constant 0 : index
      %c0_12 = arith.constant 0 : index
      %13 = vector.load %arg6[%c0_11, %c0_12] : memref<16x128xf32, #tpu.memory_space<vmem>>, vector<16x128xf32>
      tpu.vector_store %arg6[%c0_11, %c0_12], %12 {strides = array<i32>} : memref<16x128xf32, #tpu.memory_space<vmem>>, vector<16x128xf32>,
    } else {
    }
    %c0 = arith.constant 0 : index
    %c0_1 = arith.constant 0 : index
    %3 = vector.load %arg4[%c0, %c0_1] : memref<128x128xbf16, #tpu.memory_space<vmem>>, vector<128x128xbf16>
    %c0_2 = arith.constant 0 : index
    %c0_3 = arith.constant 0 : index
    %4 = vector.load %arg6[%c0_2, %c0_3] : memref<16x128xf32, #tpu.memory_space<vmem>>, vector<16x128xf32>
    %c0_4 = arith.constant 0 : index
    %c0_5 = arith.constant 0 : index
    %5 = vector.load %arg3[%c0_4, %c0_5] : memref<16x128xbf16, #tpu.memory_space<vmem>>, vector<16x128xbf16>
    %cst = arith.constant dense<0.000000e+00> : vector<16x128xf32>
    %6 = tpu.matmul %5, %3, %cst {dimension_numbers = #tpu.dot_dimension_numbers<[1], [1], [0], [0], [0, 0, 1, 0], [], []>} : vector<16x128xbf16>, vector<128x128xbf16>, vector<16x128xf32> -> vector<16x128xf32>
    %7 = arith.addf %4, %6 : vector<16x128xf32>
    %c0_6 = arith.constant 0 : index
    %c0_7 = arith.constant 0 : index
    %8 = vector.load %arg6[%c0_6, %c0_7] : memref<16x128xf32, #tpu.memory_space<vmem>>, vector<16x128xf32>
    tpu.vector_store %arg6[%c0_6, %c0_7], %7 {strides = array<i32>} : memref<16x128xf32, #tpu.memory_space<vmem>>, vector<16x128xf32>,
    %c0_i32_8 = arith.constant 0 : i32
    %9 = arith.cmpi eq, %arg2, %c0_i32_8 : i32
    %10 = arith.extui %9 : i1 to i32
    %c0_i32_9 = arith.constant 0 : i32
    %11 = arith.cmpi ne, %10, %c0_i32_9 : i32
    scf.if %11 {
      %c0_10 = arith.constant 0 : index
      %c0_11 = arith.constant 0 : index
      %12 = vector.load %arg6[%c0_10, %c0_11] : memref<16x128xf32, #tpu.memory_space<vmem>>, vector<16x128xf32>
      %c0_12 = arith.constant 0 : index
      %c0_13 = arith.constant 0 : index
      %13 = vector.load %arg5[%c0_12, %c0_13] : memref<1x128xf32, #tpu.memory_space<vmem>>, vector<1x128xf32>
      %14 = vector.broadcast %13 : vector<1x128xf32> to vector<16x128xf32>
      %15 = arith.addf %12, %14 : vector<16x128xf32>
      %c0_14 = arith.constant 0 : index
      %c0_15 = arith.constant 0 : index
      %16 = vector.load %arg6[%c0_14, %c0_15] : memref<16x128xf32, #tpu.memory_space<vmem>>, vector<16x128xf32>
      tpu.vector_store %arg6[%c0_14, %c0_15], %15 {strides = array<i32>} : memref<16x128xf32, #tpu.memory_space<vmem>>, vector<16x128xf32>,
    } else {
    }
    return
  }
  func.func @transform_0(%arg0: i32, %arg1: i32, %arg2: i32) -> (i32, i32) {
    %c0_i32 = arith.constant 0 : i32
    return %arg0, %arg2 : i32, i32
  }
  func.func @transform_1(%arg0: i32, %arg1: i32, %arg2: i32) -> (i32, i32) {
    %c0_i32 = arith.constant 0 : i32
    return %arg1, %arg2 : i32, i32
  }
  func.func @transform_2(%arg0: i32, %arg1: i32, %arg2: i32) -> (i32, i32) {
    %c0_i32 = arith.constant 0 : i32
    %c0_i32_0 = arith.constant 0 : i32
    return %c0_i32, %arg1 : i32, i32
  }
  func.func @transform_3(%arg0: i32, %arg1: i32, %arg2: i32) -> (i32, i32) {
    %c0_i32 = arith.constant 0 : i32
    return %arg0, %arg1 : i32, i32
  }
}

</mosaic_0001>

<bundles_post_ra>
// kernel: tpu_custom_call.1
= control target key start
LH: loop header
LB: loop body
LE: loop exit
PB: predicated region body
PF: predicated region fallthrough
CT: control target
= control target key end

     0   :  { %8 = vsyncpa [#allocation3], 0  ;;  %s400_s0 = inlined_call_operand.hbm [shape: bf16[16,128], index: 0, kind: input, shape index: {}]   ;;  %s401_s1 = inlined_call_operand.hbm [shape: bf16[128,128], index: 1, kind: input, shape index: {}]   ;;  %s402_s2 = inlined_call_operand.vmem [shape: f32[1,128], index: 2, kind: input, shape index: {}]   ;;  %s403_s3 = inlined_call_operand.hbm [shape: f32[16,128], index: 3, kind: output, shape index: {}]  }
   0x1   :  { %9 = vsyncpa [#allocation6], 0 }
   0x2   :  { %10 = vsyncpa [#allocation4], 0  ;;  %s332_s12 = smov [#allocation2]   ;;  %s260_s16 = scalar_lea.hbm %s400_s0, 128 }
   0x3   :  { %s16_s13 = sshll.u32 %s332_s12, 4  ;;  %p261_p0 = scmp.ne.s32.totalorder %s400_s0, %s260_s16  ;;  %s17_s13 = int_to_ptr.vmem [resolvable:$true] %s16_s13 }
   0x4   :  { %p264_p1 = scmp.lt.u32.totalorder %s260_s16, %s400_s0 }
   0x6   :  { %p266_p2 = pnand %p264_p1, %p261_p0 }
   0x8   :  { %269 = shalt.err (!%p266_p2)
}
   0x9   :  { %s270_s21 = scalar_lea.vmem %s17_s13, 128  ;;  %p275_p4 = scmp.lt.s32.totalorder %s17_s13, %s17_s13 }
   0xa   :  { %p271_p3 = scmp.ne.s32.totalorder %s17_s13, %s270_s21  ;;  %p276_p5 = scmp.lt.s32.totalorder %s270_s21, %s270_s21 }
   0xc   :  { %p277_p6 = por %p276_p5, %p275_p4 }
   0xe   :  { %p278_p7 = pnand %p277_p6, %p271_p3 }
  0x10   :  { %281 = shalt.err (!%p278_p7)
}
  0x11   :  { %s333_s22 = smov 64   ;;  %s334_s23 = smov 4  }
  0x12   :  { %22 = dma.hbm_to_vmem [thread:$0]  %s400_s0, 128, %s17_s13, [#allocation3], %s333_s22, %s333_s22, %s334_s23  }
  0x13   :  { %s335_s26 = smov [#allocation5]   ;;  %s282_s30 = scalar_lea.hbm %s401_s1, 1024 }
  0x14   :  { %s28_s27 = sshll.u32 %s335_s26, 4  ;;  %p283_p8 = scmp.ne.s32.totalorder %s401_s1, %s282_s30  ;;  %s29_s27 = int_to_ptr.vmem [resolvable:$true] %s28_s27 }
  0x15   :  { %p286_p9 = scmp.lt.u32.totalorder %s282_s30, %s401_s1 }
  0x17   :  { %p288_p10 = pnand %p286_p9, %p283_p8 }
  0x19   :  { %291 = shalt.err (!%p288_p10)
}
  0x1a   :  { %s292_s8 = scalar_lea.vmem %s29_s27, 1024  ;;  %p297_p12 = scmp.lt.s32.totalorder %s29_s27, %s29_s27 }
  0x1b   :  { %p293_p11 = scmp.ne.s32.totalorder %s29_s27, %s292_s8  ;;  %p298_p13 = scmp.lt.s32.totalorder %s292_s8, %s292_s8 }
  0x1d   :  { %p299_p0 = por %p298_p13, %p297_p12 }
  0x1f   :  { %p300_p1 = pnand %p299_p0, %p293_p11 }
  0x21   :  { %303 = shalt.err (!%p300_p1)
}
  0x22   :  { %34 = dma.hbm_to_vmem [thread:$0]  %s401_s1, 1024, %s29_s27, [#allocation6], %s333_s22, %s333_s22, %s334_s23  }
  0x23   :  { %326 = dma.done.wait [#allocation3], 128  }
  0x24   :  { %327 = vsyncadd [#allocation3], 4294967168 }
  0x25   :  { %328 = dma.done.wait [#allocation6], 1024  }
  0x26   :  { %329 = vsyncadd [#allocation6], 4294966272  ;;  %v336_v0 = vmov 0.0   ;;  %vm337_vm0 = vmmov 0   ;;  %v251_v1 = vld [vmem:[#allocation5] sm:$0xff]   ;;  %v252_v2 = vld [vmem:[#allocation5 + $0x8] sm:$0xff]  }
  0x27   :  { %222 = vmatprep.subr.bf16.mxu0 %v336_v0  ;;  %238 = vmatprep.mubr.msk.bf16.mxu0 %vm337_vm0, %v336_v0  ;;  %v253_v3 = vld [vmem:[#allocation5 + $0x10] sm:$0xff]   ;;  %v254_v4 = vld [vmem:[#allocation5 + $0x18] sm:$0xff]   ;;  %v255_v5 = vld [vmem:[#allocation5 + $0x20] sm:$0xff]   ;;  %s338_s11 = smov [#allocation7]  }
  0x28   :  { %223 = vmatpush3.bf16.xpose.msra.mxu0 %v251_v1  ;;  %v256_v6 = vld [vmem:[#allocation5 + $0x28] sm:$0xff]   ;;  %v257_v7 = vld [vmem:[#allocation5 + $0x30] sm:$0xff]   ;;  %v258_v8 = vld [vmem:[#allocation5 + $0x38] sm:$0xff]   ;;  %s190_s12 = sshll.u32 %s338_s11, 4  ;;  %s191_s12 = int_to_ptr.vmem [resolvable:$true] %s190_s12 }
  0x29   :  { %224 = vmatprep.subr.bf16.mxu0 %v336_v0  ;;  %v259_v9 = vld [vmem:[#allocation2] sm:$0xff]   ;;  %s304_s13 = scalar_lea.vmem %s191_s12, 256  ;;  %p309_p3 = scmp.lt.s32.totalorder %s191_s12, %s191_s12 }
  0x2a   :  { %v212_v11 = vld [vmem:[%s402_s2] ss:$0 sm:$0xff]  ;;  %p305_p2 = scmp.ne.s32.totalorder %s191_s12, %s304_s13  ;;  %p310_p4 = scmp.lt.s32.totalorder %s304_s13, %s304_s13 }
  0x2c   :  { %p311_p5 = por %p310_p4, %p309_p3 }
  0x2e   :  { %p312_p6 = pnand %p311_p5, %p305_p2 }
  0x30   :  { %225 = vmatpush3.bf16.xpose.msra.mxu0 %v252_v2 }
  0x31   :  { %226 = vmatprep.subr.bf16.mxu0 %v336_v0 }
  0x38   :  { %227 = vmatpush3.bf16.xpose.msra.mxu0 %v253_v3 }
  0x39   :  { %228 = vmatprep.subr.bf16.mxu0 %v336_v0 }
  0x40   :  { %229 = vmatpush3.bf16.xpose.msra.mxu0 %v254_v4 }
  0x41   :  { %230 = vmatprep.subr.bf16.mxu0 %v336_v0 }
  0x48   :  { %231 = vmatpush3.bf16.xpose.msra.mxu0 %v255_v5 }
  0x49   :  { %232 = vmatprep.subr.bf16.mxu0 %v336_v0 }
  0x50   :  { %233 = vmatpush3.bf16.xpose.msra.mxu0 %v256_v6 }
  0x51   :  { %234 = vmatprep.subr.bf16.mxu0 %v336_v0 }
  0x58   :  { %235 = vmatpush3.bf16.xpose.msra.mxu0 %v257_v7 }
  0x59   :  { %236 = vmatprep.subr.bf16.mxu0 %v336_v0 }
  0x60   :  { %237 = vmatpush3.bf16.xpose.msra.mxu0 %v258_v8 }
  0x67   :  { %239 = vmatmul.mubr.bf16.vlgmr.msra.gmra.mrb[0].mxu0 %v259_v9 }
 0x13a   :  { %v158_v10 = vpop.f32.mrb[0].mxu0 }
 0x13b   :  { %v240_v12 = vpop.f32.mrb[1].mxu0  ;;  %v181_v15 = vadd.f32 %v212_v11, %v158_v10 }
 0x13c   :  { %v161_v13 = vpop.f32.mrb[2].mxu0 }
 0x13d   :  { %v241_v14 = vpop.f32.mrb[3].mxu0  ;;  %v182_v16 = vadd.f32 %v212_v11, %v161_v13  ;;  %183 = vst [vmem:[#allocation7] sm:$0xff] %v181_v15 }
 0x13f   :  { %184 = vst [vmem:[#allocation7 + $0x8] sm:$0xff] %v182_v16 }
 0x140   :  { %315 = shalt.err (!%p312_p6)
}
 0x141   :  { %s316_s2 = scalar_lea.hbm %s403_s3, 256 }
 0x142   :  { %p317_p7 = scmp.ne.s32.totalorder %s403_s3, %s316_s2  ;;  %p320_p8 = scmp.lt.u32.totalorder %s316_s2, %s403_s3 }
 0x144   :  { %p322_p9 = pnand %p320_p8, %p317_p7 }
 0x146   :  { %325 = shalt.err (!%p322_p9)
}
 0x147   :  { %s339_s20 = smov 128   ;;  %s340_s21 = smov 8  }
 0x148   :  { %196 = dma.vmem_to_hbm [thread:$0]  %s191_s12, 256, %s403_s3, [#allocation4], %s339_s20, %s339_s20, %s340_s21  }
 0x149   :  { %330 = dma.done.wait [#allocation4], 256  }
 0x14a   :  { %331 = vsyncadd [#allocation4], 4294967040 }
 0x14b   :  { %200 = vsyncpa [#allocation3], 1 }
 0x14c   :  { %201 = vsyncpa [#allocation6], 1 }
 0x14d   :  { %202 = vsyncpa [#allocation4], 1 }

</bundles_post_ra>
